<compile_context>
chip_gen: v5e
topology: v5e:2x2
jax: 0.10.0
libtpu: 0.0.40
codegen_flags: <defaults>
</compile_context>

<pallas_src>
import jax
import jax.numpy as jnp
from jax import lax
from jax.experimental import pallas as pl
from jax.experimental.pallas import tpu as pltpu


# ---------------------------------------------------------------------------
# Pallas kernel: fused (1x1 conv + horizontal 2x) matmul, then vertical 2x,
# for one row block of one batch element.  Internal layout is NHWC.
# ---------------------------------------------------------------------------

def _fused_up2_conv_kernel(x_ref, xtop_ref, xbot_ref, m_ref, o_ref):
    # x_ref    : (TH, W, Cin)       input rows [r*TH, (r+1)*TH) of one image
    # xtop_ref : (1,  W, Cin)       row just above the block (edge-clamped)
    # xbot_ref : (1,  W, Cin)       row just below the block (edge-clamped)
    # m_ref    : (W*Cin, 2*W*Cout)  fused (horizontal-interp x 1x1-conv) matrix
    # o_ref    : (2*TH, 2*W*Cout)   lane-dense row-major view of the NHWC output block
    TH, W, Cin = x_ref.shape
    WCo2 = m_ref.shape[1]

    # source rows r*TH-1 .. r*TH+TH (edge clamped via the halo specs)
    full = jnp.concatenate([xtop_ref[...], x_ref[...], xbot_ref[...]],
                           axis=0)                                    # (TH+2, W, Cin)

    # ONE MXU matmul = 1x1 conv + horizontal 2x bilinear interp (both linear in x):
    #   (TH+2, W*Cin) @ (W*Cin, 2*W*Cout)
    y = jnp.dot(full.reshape(TH + 2, W * Cin), m_ref[...],
                preferred_element_type=jnp.float32)                   # (TH+2, 2W*Cout)

    # vertical 2x (align_corners=False):
    #   out[2i]   = 0.25*src[i-1] + 0.75*src[i]     (edges clamped by the halos)
    #   out[2i+1] = 0.75*src[i]   + 0.25*src[i+1]
    prev_r = y[0:TH]
    cur_r = y[1:TH + 1]
    next_r = y[2:TH + 2]
    r_even = 0.25 * prev_r + 0.75 * cur_r
    r_odd = 0.75 * cur_r + 0.25 * next_r

    # interleave even/odd output rows and store lane-dense.
    out = jnp.stack([r_even, r_odd], axis=1).reshape(2 * TH, WCo2)
    o_ref[...] = out.astype(o_ref.dtype)


# ---------------------------------------------------------------------------
# Constant-matrix construction + tile sizing + wrapper
# ---------------------------------------------------------------------------

def _h_interp_matrix(W):
    """(2W, W) matrix of PyTorch 2x bilinear upsample (align_corners=False) on one axis."""
    od = jnp.arange(2 * W, dtype=jnp.float32)
    s = jnp.maximum((od + 0.5) / 2.0 - 0.5, 0.0)
    i0 = jnp.floor(s).astype(jnp.int32)
    i1 = jnp.minimum(i0 + 1, W - 1)
    f = s - i0.astype(jnp.float32)
    rows = jnp.arange(2 * W)
    h = jnp.zeros((2 * W, W), jnp.float32)
    h = h.at[rows, i0].add(1.0 - f)
    h = h.at[rows, i1].add(f)          # duplicate indices accumulate (edge clamp -> 1.0)
    return h


def _padded_bytes(shape, itemsize):
    """VMEM footprint of a tile: last dim pads to 128 lanes, 2nd-to-last to 8 sublanes."""
    lead = 1
    for d in shape[:-2]:
        lead *= d
    sub = -(-shape[-2] // 8) * 8
    lane = -(-shape[-1] // 128) * 128
    return lead * sub * lane * itemsize


def _pick_row_tile(H, W, Cin, Cout, itemsize, budget_bytes=12 * 1024 * 1024):
    """Largest row tile TH (divisor of H, multiple of 4 or H itself) whose double-buffered
    working set fits a conservative VMEM budget (safe on every generation incl. v7x)."""
    cands = sorted({d for d in range(4, H + 1, 4) if H % d == 0} | {H})
    best = cands[0]
    for th in cands:
        work = (2 * _padded_bytes((th, W, Cin), itemsize)                  # dbl-buf input
                + 4 * _padded_bytes((1, W, Cin), itemsize)                 # halo rows
                + 2 * _padded_bytes((W * Cin, 2 * W * Cout), itemsize)     # fused matrix
                + 2 * _padded_bytes((2 * th, 2 * W * Cout), itemsize)      # dbl-buf output
                + 6 * _padded_bytes((2 * th, 2 * W * Cout), 4))            # f32 temps
        if work <= budget_bytes:
            best = th
    return best


def upsample_forward(x_nchw, conv_weight, *, row_tile=None,
                     vmem_limit_bytes=32 * 1024 * 1024):
    """UpSample.forward: y = Conv1x1(Upsample2x_bilinear_align_corners_False(x)), no bias.

    x_nchw      : (N, Cin, H, W) with Cin = in_channels + s_factor   (PyTorch NCHW)
    conv_weight : (Cout, Cin, 1, 1) PyTorch Conv2d weight, Cout = in_channels
    returns     : (N, Cout, 2H, 2W)
    """
    N, Cin, H, W = x_nchw.shape
    Cout, wc_in, kh, kw = conv_weight.shape
    assert wc_in == Cin and kh == 1 and kw == 1, conv_weight.shape

    x = jnp.transpose(x_nchw, (0, 2, 3, 1))                    # (N, H, W, Cin), NHWC
    w_mat = conv_weight[:, :, 0, 0].T.astype(jnp.float32)      # (Cin, Cout)
    h = _h_interp_matrix(W)                                    # (2W, W)
    # M[wi*Cin + ci, wo*Cout + co] = h[wo, wi] * w_mat[ci, co]
    m = jnp.kron(h.T, w_mat).astype(x.dtype)                   # (W*Cin, 2W*Cout)

    th = row_tile if row_tile is not None else _pick_row_tile(
        H, W, Cin, Cout, jnp.dtype(x.dtype).itemsize)
    assert H % th == 0, (H, th)
    assert (2 * th) % 8 == 0 or th == H, th   # (8,128) alignment of the output block

    Ho, Wo = 2 * H, 2 * W
    grid = (N, H // th)

    out_flat = pl.pallas_call(
        _fused_up2_conv_kernel,
        out_shape=jax.ShapeDtypeStruct((N, Ho, Wo * Cout), x.dtype),
        grid=grid,
        in_specs=[
            # main row block
            pl.BlockSpec((None, th, W, Cin), lambda n, r: (n, r, 0, 0)),
            # 1-row halos above / below, clamped at the image border (non-overlapping
            # blocks keep automatic double-buffered pipelining).
            pl.BlockSpec((None, 1, W, Cin),
                         lambda n, r: (n, jnp.maximum(r * th - 1, 0), 0, 0)),
            pl.BlockSpec((None, 1, W, Cin),
                         lambda n, r: (n, jnp.minimum(r * th + th, H - 1), 0, 0)),
            # fused (horizontal-interp x conv) matrix: resident across the whole grid
            pl.BlockSpec((W * Cin, Wo * Cout), lambda n, r: (0, 0)),
        ],
        out_specs=pl.BlockSpec((None, 2 * th, Wo * Cout), lambda n, r: (n, r, 0)),
        compiler_params=pltpu.CompilerParams(
            dimension_semantics=("parallel", "parallel"),
            vmem_limit_bytes=vmem_limit_bytes),
    )(x, x, x, m)

    out = out_flat.reshape(N, Ho, Wo, Cout)
    return jnp.transpose(out, (0, 3, 1, 2))                    # NCHW out


# ---------------------------------------------------------------------------
# Reference (PyTorch semantics) + self-check
# ---------------------------------------------------------------------------

def _bilinear_up2_ref(x_nchw):
    """nn.Upsample(scale_factor=2, mode='bilinear', align_corners=False) in plain JAX."""
    N, C, H, W = x_nchw.shape

    def src(size):
        od = jnp.arange(2 * size, dtype=jnp.float32)
        s = jnp.maximum((od + 0.5) / 2.0 - 0.5, 0.0)
        i0 = jnp.floor(s).astype(jnp.int32)
        i1 = jnp.minimum(i0 + 1, size - 1)
        frac = s - i0.astype(jnp.float32)
        return i0, i1, frac

    h0, h1, fh = src(H)
    w0, w1, fw = src(W)
    v = (x_nchw[:, :, h0, :] * (1.0 - fh)[None, None, :, None]
         + x_nchw[:, :, h1, :] * fh[None, None, :, None])
    out = (v[:, :, :, w0] * (1.0 - fw)[None, None, None, :]
           + v[:, :, :, w1] * fw[None, None, None, :])
    return out


if __name__ == "__main__":
    # Conv2d(in_channels + s_factor, in_channels, 1, bias=False) after 2x bilinear upsample.
    in_channels, s_factor = 4, 4
    N, H, W = 2, 16, 16
    Cin = in_channels + s_factor

    key = jax.random.PRNGKey(0)
    kx, kw = jax.random.split(key)
    x = jax.random.normal(kx, (N, Cin, H, W), jnp.float32)
    conv_w = 0.1 * jax.random.normal(kw, (in_channels, Cin, 1, 1), jnp.float32)

    # once with explicit row tiling (grid=(N,2), exercises interior halos) and once auto-sized
    out_tiled = jax.block_until_ready(upsample_forward(x, conv_w, row_tile=8))
    out_auto = jax.block_until_ready(upsample_forward(x, conv_w))

    up = _bilinear_up2_ref(x)
    ref = jnp.einsum("oc,nchw->nohw", conv_w[:, :, 0, 0], up,
                     precision=lax.Precision.HIGHEST)

    assert out_tiled.shape == (N, in_channels, 2 * H, 2 * W), out_tiled.shape
    err_t = float(jnp.max(jnp.abs(out_tiled - ref)))
    err_a = float(jnp.max(jnp.abs(out_auto - ref)))
    assert jnp.allclose(out_tiled, ref, atol=1e-3, rtol=1e-3), err_t
    assert jnp.allclose(out_auto, ref, atol=1e-3, rtol=1e-3), err_a
    print("KERNEL_OK")
</pallas_src>

<mosaic_0001>
module attributes {stable_mosaic.version = 11 : i64} {
  func.func @_fused_up2_conv_kernel(%arg0: i32, %arg1: i32, %arg2: memref<1x8x16x8xf32, #tpu.memory_space<vmem>>, %arg3: memref<1x1x16x8xf32, #tpu.memory_space<vmem>>, %arg4: memref<1x1x16x8xf32, #tpu.memory_space<vmem>>, %arg5: memref<128x128xf32, #tpu.memory_space<vmem>>, %arg6: memref<1x16x128xf32, #tpu.memory_space<vmem>>) attributes {dimension_semantics = [#tpu.dimension_semantics<parallel>, #tpu.dimension_semantics<parallel>], iteration_bounds = array<i64: 2, 2>, scalar_prefetch = 0 : i64, scratch_operands = 0 : i64, tpu.core_type = #tpu.core_type<tc>, window_params = [{transform_indices = @transform_0, window_bounds = array<i64: 1, 8, 16, 8>}, {transform_indices = @transform_1, window_bounds = array<i64: 1, 1, 16, 8>}, {transform_indices = @transform_2, window_bounds = array<i64: 1, 1, 16, 8>}, {pipeline_mode = #tpu.pipeline_mode<synchronous>, transform_indices = @transform_3, window_bounds = array<i64: 128, 128>}, {transform_indices = @transform_4, window_bounds = array<i64: 1, 16, 128>}]} {
    %c0 = arith.constant 0 : index
    %c0_0 = arith.constant 0 : index
    %c0_1 = arith.constant 0 : index
    %c0_2 = arith.constant 0 : index
    %0 = vector.load %arg3[%c0, %c0_0, %c0_1, %c0_2] : memref<1x1x16x8xf32, #tpu.memory_space<vmem>>, vector<1x1x16x8xf32>
    %1 = vector.shape_cast %0 : vector<1x1x16x8xf32> to vector<1x16x8xf32>
    %c0_3 = arith.constant 0 : index
    %c0_4 = arith.constant 0 : index
    %c0_5 = arith.constant 0 : index
    %c0_6 = arith.constant 0 : index
    %2 = vector.load %arg2[%c0_3, %c0_4, %c0_5, %c0_6] : memref<1x8x16x8xf32, #tpu.memory_space<vmem>>, vector<1x8x16x8xf32>
    %3 = vector.shape_cast %2 : vector<1x8x16x8xf32> to vector<8x16x8xf32>
    %c0_7 = arith.constant 0 : index
    %c0_8 = arith.constant 0 : index
    %c0_9 = arith.constant 0 : index
    %c0_10 = arith.constant 0 : index
    %4 = vector.load %arg4[%c0_7, %c0_8, %c0_9, %c0_10] : memref<1x1x16x8xf32, #tpu.memory_space<vmem>>, vector<1x1x16x8xf32>
    %5 = vector.shape_cast %4 : vector<1x1x16x8xf32> to vector<1x16x8xf32>
    %6 = tpu.concatenate %1, %3, %5 in 0 : vector<1x16x8xf32>, vector<8x16x8xf32>, vector<1x16x8xf32> -> vector<10x16x8xf32>
    %7 = vector.shape_cast %6 : vector<10x16x8xf32> to vector<10x128xf32>
    %c0_11 = arith.constant 0 : index
    %c0_12 = arith.constant 0 : index
    %8 = vector.load %arg5[%c0_11, %c0_12] : memref<128x128xf32, #tpu.memory_space<vmem>>, vector<128x128xf32>
    %cst = arith.constant dense<0.000000e+00> : vector<10x128xf32>
    %9 = tpu.matmul %7, %8, %cst {dimension_numbers = #tpu.dot_dimension_numbers<[1], [0], [0], [1], [0, 0, 1, 1], [], []>} : vector<10x128xf32>, vector<128x128xf32>, vector<10x128xf32> -> vector<10x128xf32>
    %10 = vector.extract_strided_slice %9 {offsets = [0, 0], sizes = [8, 128], strides = [1, 1]} : vector<10x128xf32> to vector<8x128xf32>
    %11 = vector.extract_strided_slice %9 {offsets = [1, 0], sizes = [8, 128], strides = [1, 1]} : vector<10x128xf32> to vector<8x128xf32>
    %12 = vector.extract_strided_slice %9 {offsets = [2, 0], sizes = [8, 128], strides = [1, 1]} : vector<10x128xf32> to vector<8x128xf32>
    %cst_13 = arith.constant 2.500000e-01 : f32
    %13 = vector.broadcast %cst_13 : f32 to vector<8x128xf32>
    %14 = arith.mulf %13, %10 : vector<8x128xf32>
    %cst_14 = arith.constant 7.500000e-01 : f32
    %15 = vector.broadcast %cst_14 : f32 to vector<8x128xf32>
    %16 = arith.mulf %15, %11 : vector<8x128xf32>
    %17 = arith.addf %14, %16 : vector<8x128xf32>
    %cst_15 = arith.constant 7.500000e-01 : f32
    %18 = vector.broadcast %cst_15 : f32 to vector<8x128xf32>
    %19 = arith.mulf %18, %11 : vector<8x128xf32>
    %cst_16 = arith.constant 2.500000e-01 : f32
    %20 = vector.broadcast %cst_16 : f32 to vector<8x128xf32>
    %21 = arith.mulf %20, %12 : vector<8x128xf32>
    %22 = arith.addf %19, %21 : vector<8x128xf32>
    %23 = vector.shape_cast %17 : vector<8x128xf32> to vector<8x1x128xf32>
    %24 = vector.shape_cast %22 : vector<8x128xf32> to vector<8x1x128xf32>
    %25 = tpu.concatenate %23, %24 in 1 : vector<8x1x128xf32>, vector<8x1x128xf32> -> vector<8x2x128xf32>
    %26 = vector.shape_cast %25 : vector<8x2x128xf32> to vector<16x128xf32>
    %c0_17 = arith.constant 0 : index
    %c0_18 = arith.constant 0 : index
    %c0_19 = arith.constant 0 : index
    %27 = vector.load %arg6[%c0_17, %c0_18, %c0_19] : memref<1x16x128xf32, #tpu.memory_space<vmem>>, vector<1x16x128xf32>
    %28 = vector.shape_cast %27 : vector<1x16x128xf32> to vector<16x128xf32>
    %29 = vector.shape_cast %26 : vector<16x128xf32> to vector<1x16x128xf32>
    tpu.vector_store %arg6[%c0_17, %c0_18, %c0_19], %29 {strides = array<i32>} : memref<1x16x128xf32, #tpu.memory_space<vmem>>, vector<1x16x128xf32>,
    return
  }
  func.func @transform_0(%arg0: i32, %arg1: i32) -> (i32, i32, i32, i32) {
    %c0_i32 = arith.constant 0 : i32
    %c0_i32_0 = arith.constant 0 : i32
    %c0_i32_1 = arith.constant 0 : i32
    return %arg0, %arg1, %c0_i32, %c0_i32_0 : i32, i32, i32, i32
  }
  func.func @transform_1(%arg0: i32, %arg1: i32) -> (i32, i32, i32, i32) {
    %c8_i32 = arith.constant 8 : i32
    %0 = arith.muli %arg1, %c8_i32 : i32
    %c1_i32 = arith.constant 1 : i32
    %1 = arith.subi %0, %c1_i32 : i32
    %c0_i32 = arith.constant 0 : i32
    %2 = arith.maxsi %1, %c0_i32 : i32
    %c0_i32_0 = arith.constant 0 : i32
    %c0_i32_1 = arith.constant 0 : i32
    %c0_i32_2 = arith.constant 0 : i32
    return %arg0, %2, %c0_i32_0, %c0_i32_1 : i32, i32, i32, i32
  }
  func.func @transform_2(%arg0: i32, %arg1: i32) -> (i32, i32, i32, i32) {
    %c8_i32 = arith.constant 8 : i32
    %0 = arith.muli %arg1, %c8_i32 : i32
    %c8_i32_0 = arith.constant 8 : i32
    %1 = arith.addi %0, %c8_i32_0 : i32
    %c15_i32 = arith.constant 15 : i32
    %2 = arith.minsi %1, %c15_i32 : i32
    %c0_i32 = arith.constant 0 : i32
    %c0_i32_1 = arith.constant 0 : i32
    %c0_i32_2 = arith.constant 0 : i32
    return %arg0, %2, %c0_i32, %c0_i32_1 : i32, i32, i32, i32
  }
  func.func @transform_3(%arg0: i32, %arg1: i32) -> (i32, i32) {
    %c0_i32 = arith.constant 0 : i32
    %c0_i32_0 = arith.constant 0 : i32
    %c0_i32_1 = arith.constant 0 : i32
    return %c0_i32, %c0_i32_0 : i32, i32
  }
  func.func @transform_4(%arg0: i32, %arg1: i32) -> (i32, i32, i32) {
    %c0_i32 = arith.constant 0 : i32
    %c0_i32_0 = arith.constant 0 : i32
    return %arg0, %arg1, %c0_i32 : i32, i32, i32
  }
}

</mosaic_0001>

<bundles_post_ra>
// kernel: tpu_custom_call.1
= control target key start
LH: loop header
LB: loop body
LE: loop exit
PB: predicated region body
PF: predicated region fallthrough
CT: control target
= control target key end

     0   :  { %9 = vsyncpa [#allocation3], 0  ;;  %s2006_s0 = inlined_call_operand.vmem [shape: f32[2,16,16,8], index: 0, kind: input, shape index: {}]   ;;  %s2007_s1 = inlined_call_operand.vmem [shape: f32[2,16,16,8], index: 1, kind: input, shape index: {}]   ;;  %s2008_s2 = inlined_call_operand.vmem [shape: f32[2,16,16,8], index: 2, kind: input, shape index: {}]   ;;  %s2009_s3 = inlined_call_operand.vmem [shape: f32[128,128], index: 3, kind: input, shape index: {}]   ;;  %s2010_s4 = inlined_call_operand.hbm [shape: f32[2,32,128], index: 4, kind: output, shape index: {}]  }
   0x1   :  { %11 = vsyncpa [#allocation3 + $0x1], 0  ;;  %s1521_s15 = smov 0   ;;  %s1523_s16 = smov 0  }
   0x2   :  { %s1525_s17 = smov 0   ;;  %s1527_s18 = smov 0  }
   0x3   :  { %s1529_s19 = smov 0   ;;  %s1531_s20 = smov 0  }
   0x4   :  { %s1533_s21 = smov 0   ;;  %s1535_s22 = smov 0  }
   0x5 LB: > { %s1161_s23 = sadd.s32 4294967295, %s1476_s22   ;;  %s1162_s24 = sadd.s32 4294967294, %s1476_s22   ;;  %s1476_s22 = sphi %s1535_s22, %s17_s22   ;;  %s1472_s21 = sphi %s1533_s21, %s2020_s21   ;;  %s1468_s20 = sphi %s1531_s20, %s2019_s20   ;;  %s1464_s19 = sphi %s1529_s19, %s2018_s19   ;;  %s1460_s18 = sphi %s1527_s18, %s2017_s18   ;;  %s1456_s17 = sphi %s1525_s17, %s2016_s17   ;;  %s1452_s16 = sphi %s1523_s16, %s2015_s16   ;;  %s1448_s15 = sphi %s1521_s15, %s2014_s15  }
   0x6   : > { %s26_s25 = sadd.s32 1, %s1468_s20  ;;  %s29_s26 = sadd.s32 1, %s1472_s21 }
   0x7   : > { %p27_p0 = scmp.ge.s32.totalorder %s26_s25, 2  ;;  %p169_p1 = scmp.ne.s32.totalorder %s1456_s17, %s1452_s16 }
   0x8   : > { %p170_p2 = scmp.eq.s32.totalorder %s1161_s23, 3  ;;  %p175_p5 = scmp.ne.s32.totalorder %s1452_s16, %s1448_s15 }
   0x9   : > { %s2022_s25 = smov (%p27_p0, %s26_s25), 0  ;;  %s2024_s26 = smov (!%p27_p0, %s29_s26), %s1472_s21 }
   0xa   : > { %s155_s27 = ssub.s32 %s1468_s20, %s2022_s25  ;;  %p1572_p3 = por %p170_p2, %p169_p1 }
   0xb   : > { %p31_p4 = scmp.ge.s32.totalorder %s2024_s26, 2  ;;  %p176_p6 = scmp.eq.s32.totalorder %s1162_s24, 3 }
   0xc   : > { %p1171_p7 = scmp.ge.s32.totalorder %s1476_s22, 1  ;;  %p251_p9 = scmp.lt.s32.totalorder %s1476_s22, 5 }
   0xd   : > { %s2026_s26 = smov (%p31_p4, %s2024_s26), 0  ;;  %p1581_p8 = por %p176_p6, %p175_p5 }
   0xe   : > { %s154_s30 = ssub.s32 %s1472_s21, %s2026_s26  ;;  %s159_s5 = sadd.s32 1, %s1456_s17 }
   0xf   : > { %s156_s6 = sor.u32 %s155_s27, %s154_s30  ;;  %p252_p10 = pnand %p1171_p7, %p251_p9 }
  0x10   : > { %p157_p11 = scmp.eq.s32.totalorder %s156_s6, 0  ;;  %s1173_s8 = sshll.u32 (!%p252_p10), %s1460_s18, 3 }
  0x11   : > { %255 = sbr.rel (%p252_p10) target bundleno = 376 (0x178), region = 36  ;;  %p309_p12 = scmp.lt.s32.totalorder (!%p252_p10), %s1464_s19, 1 }
  0x12   : > { %s1590_s7 = scalar_select %p157_p11, %s1456_s17, %s159_s5  }
  0x13   : > { %p311_p13 = scmp.lt.s32.totalorder (!%p252_p10), %s1173_s8, 15  ;;  %s1178_s9 = sadd.s32 (!%p252_p10), 4294967295, %s1173_s8 }
  0x14   : > { %p321_p0 = scmp.gt.s32.totalorder (!%p252_p10), %s1178_s9, 0  ;;  %p1179_p1 = scmp.lt.s32.totalorder (!%p252_p10), %s1178_s9, 15 }
  0x15   : > { %s337_s23 = sadd.s32 (!%p252_p10), 8, %s1173_s8  ;;  %s1490_s5 = smov (!%p252_p10), 40  }
  0x16   : > { %s310_s10 = scalar_select %p309_p12, %s1464_s19, 1  ;;  %v1478_v0 = vmov 1983009808   ;;  %vm375_vm0 = vcmask 1047556   ;;  %v1479_v16 = vmov 1934713408  }
  0x17   : > { %s312_s11 = scalar_select %p311_p13, %s1173_s8, 15  ;;  %v380_v1 = vunpack.c.l.s4 %v1478_v0  ;;  %v428_v17 = vunpack.c.l.s4 %v1479_v16  ;;  %vm823_vm1 = vcmask 64512   ;;  %vm826_vm2 = vcmask 130048  }
  0x18   : > { %s1595_s12 = sshll.u32 %s310_s10, 5  ;;  %p1598_p2 = scmp.lt.s32.totalorder %s337_s23, 15  ;;  %vm829_vm3 = vcmask 195584   ;;  %vm832_vm4 = vcmask 261120   ;;  %vm835_vm5 = vcmask 326656   ;;  %vm838_vm6 = vcmask 392192  }
  0x19   : > { %s1174_s13 = sshll.u32 %s312_s11, 1  ;;  %v1610_v5 = vunpack.c.0.s8 %v380_v1  ;;  %v1641_v30 = vunpack.c.0.s8 %v428_v17  ;;  %vm841_vm7 = vcmask 457728   ;;  %vm844_vm8 = vcmask 523264  }
  0x1a   : > { %s315_s14 = sadd.s32 %s1595_s12, %s1174_s13  ;;  %s2028_s23 = smov (!%p1598_p2, %s337_s23), 15  ;;  %vm847_vm9 = vcmask 588800   ;;  %vm850_vm10 = vcmask 654336   ;;  %vm853_vm11 = vcmask 719872   ;;  %vm856_vm12 = vcmask 785408  }
  0x1b   : > { %s1176_s24 = sshll.u32 %s315_s14, 3  ;;  %s2032_s23 = smov (!%p1598_p2, %s2028_s23), 15  ;;  %vm859_vm13 = vcmask 850944   ;;  %vm862_vm14 = vcmask 916480   ;;  %vm865_vm15 = vcmask 982016  }
  0x1c   : > { %s1605_s6 = scalar_lea.vmem %s2006_s0, %s1176_s24  ;;  %s1191_s11 = sshll.u32 %s2032_s23, 1 }
  0x1d   : > { %s322_s8 = scalar_select %p321_p0, %s1178_s9, 0  ;;  %v356_v2 = vld [vmem:[%s1605_s6] sm:$0xff]  ;;  %v358_v3 = vld [vmem:[%s1605_s6 + $0x10] sm:$0xff]  ;;  %v1666_v40 = vld [vmem:[%s1605_s6 + $0x18] sm:$0xff] }
  0x1e   : > { %v360_v4 = vld [vmem:[%s1605_s6 + $0x20] sm:$0xff]  ;;  %v362_v6 = vld [vmem:[%s1605_s6 + $0x30] sm:$0xff]  ;;  %v374_v9 = vrot.slane %v358_v3, 4  ;;  %v389_v13 = vrot.slane %v356_v2, 4  ;;  %s346_s14 = sadd.s32 %s1191_s11, %s1595_s12  ;;  %v1669_v41 = vld [vmem:[%s1605_s6 + $0x28] sm:$0xff]  ;;  %v539_v53 = vrot.slane %v1666_v40, 4 }
  0x1f   : > { %v364_v7 = vld [vmem:[%s1605_s6 + $0x40] sm:$0xff]  ;;  %v366_v8 = vld [vmem:[%s1605_s6 + $0x50] sm:$0xff]  ;;  %v387_v10 = vrot.slane %v360_v4, 4  ;;  %s2030_s8 = smov (!%p1179_p1, %s322_s8), 15  ;;  %v401_v14 = vrot.slane %v362_v6, 4  ;;  %s1193_s30 = sshll.u32 %s346_s14, 3 }
  0x20   : > { %v368_v11 = vld [vmem:[%s1605_s6 + $0x60] sm:$0xff]  ;;  %v370_v12 = vld [vmem:[%s1605_s6 + $0x70] sm:$0xff]  ;;  %v413_v15 = vrot.slane %v364_v7, 4  ;;  %v399_v20 = vrot.slane %v366_v8, 4  ;;  %s1184_s10 = sshll.u32 %s2030_s8, 1  ;;  %v390_v22 = vsel %vm375_vm0, %v360_v4, %v389_v13  ;;  %v551_v54 = vrot.slane %v1669_v41, 4 }
  0x21   : > { %v487_v18 = vrot.slane %v370_v12, 4  ;;  %v388_v19 = vsel %vm375_vm0, %v387_v10, %v356_v2  ;;  %v411_v21 = vrot.slane %v368_v11, 4  ;;  %v402_v23 = vsel %vm375_vm0, %v366_v8, %v401_v14  ;;  %s329_s9 = sadd.s32 %s1184_s10, %s1595_s12  ;;  %s1655_s12 = scalar_lea.vmem %s2008_s2, %s1193_s30  ;;  %v1710_v0 = vld [vmem:[%s1605_s6 + $0x8] sm:$0xff]  ;;  %v1713_v1 = vld [vmem:[%s1605_s6 + $0x58] sm:$0xff] }
  0x22   : > { %v414_v24 = vsel %vm375_vm0, %v368_v11, %v413_v15  ;;  %v1627_v25 = vperm.slane %v388_v19, %v1610_v5  ;;  %v1631_v26 = vperm.slane %v390_v22, %v1610_v5  ;;  %v1634_v27 = vperm.slane %v402_v23, %v1610_v5  ;;  %s1186_s13 = sshll.u32 %s329_s9, 3  ;;  %v372_v42 = vld [vmem:[%s1655_s12] sm:$0xff]  ;;  %v1735_v13 = vld [vmem:[%s1605_s6 + $0x68] sm:$0xff]  ;;  %v1756_v23 = vld [vmem:[%s1605_s6 + $0x78] sm:$0xff]  ;;  %s1481_s10 = smov 8  }
  0x23   : > { %v1637_v28 = vperm.slane %v414_v24, %v1610_v5  ;;  %v488_v29 = vsel %vm375_vm0, 0.0, %v487_v18  ;;  %v400_v31 = vsel %vm375_vm0, %v399_v20, %v362_v6  ;;  %v412_v32 = vsel %vm375_vm0, %v411_v21, %v364_v7  ;;  %s331_s27 = scalar_lea.vmem %s2007_s1, %s1186_s13  ;;  %v1753_v22 = vld [vmem:[%s1605_s6 + $0x48] sm:$0xff]  ;;  %s1482_s9 = smov 16  }
  0x24   : > { %v1650_v34 = vperm.slane %v412_v32, %v1610_v5  ;;  %v354_v35 = vld [vmem:[%s331_s27] sm:$0xff]  ;;  %v435_v36 = vrot.slane %v1631_v26, 4  ;;  %v1659_v37 = vperm.slane %v488_v29, %v1610_v5  ;;  %v1662_v38 = vperm.slane %v400_v31, %v1610_v5  ;;  %v1699_v59 = vld [vmem:[%s331_s27 + $0x8] sm:$0xff]  ;;  %s1483_s11 = smov 64   ;;  %s1484_s13 = smov 72  }
  0x25   : > { %v459_v33 = vrot.slane %v1637_v28, 4  ;;  %v423_v39 = vrot.slane %v1627_v25, 4  ;;  %v377_v43 = vrot.slane %v354_v35, 4  ;;  %v376_v45 = vsel %vm375_vm0, %v374_v9, %v354_v35  ;;  %v1759_v24 = vld [vmem:[%s1655_s12 + $0x8] sm:$0xff]  ;;  %s1485_s14 = smov 80   ;;  %s1486_s23 = smov 24  }
  0x26   : > { %v447_v46 = vrot.slane %v1650_v34, 4  ;;  %v497_v48 = vrot.slane %v372_v42, 4  ;;  %v1680_v49 = vperm.slane %v376_v45, %v1610_v5  ;;  %v1683_v50 = vperm.slane %v370_v12, %v1610_v5  ;;  %v1732_v12 = vld [vmem:[%s1605_s6 + $0x38] sm:$0xff]  ;;  %s1480_s6 = smov 32   ;;  %s1487_s24 = smov 48  }
  0x27   : > { %v460_v44 = vsel %vm375_vm0, %v459_v33, %v1634_v27  ;;  %v378_v51 = vsel %vm375_vm0, %v358_v3, %v377_v43  ;;  %v1687_v52 = vperm.slane %v372_v42, %v1610_v5  ;;  %v521_v3 = vrot.slane %v1659_v37, 4  ;;  %s1488_s27 = smov 56   ;;  %s1489_s30 = smov 88  }
  0x28   : > { %v1677_v47 = vperm.slane %v460_v44, %v1641_v30  ;;  %v1692_v55 = vperm.slane %v378_v51, %v1610_v5  ;;  %v498_v56 = vsel %vm375_vm0, 0.0, %v497_v48  ;;  %v424_v57 = vsel %vm375_vm0, %v423_v39, %v1680_v49  ;;  %s1491_s8 = smov 104   ;;  %s1492_s12 = smov 112  }
  0x29   : > { %v448_v58 = vsel %vm375_vm0, %v447_v46, %v1662_v38  ;;  %v1703_v61 = vperm.slane %v498_v56, %v1610_v5  ;;  %v1706_v62 = vperm.slane %v424_v57, %v1641_v30  ;;  %v507_v63 = vrot.slane %v1687_v52, 4 }
  0x2a   : > { %v479_v60 = vrot.slane %v1677_v47, 4  ;;  %v436_v2 = vsel %vm375_vm0, %v435_v36, %v1692_v55  ;;  %v449_v4 = vrot.slane %v1662_v38, 4  ;;  %v1724_v8 = vperm.slane %v448_v58, %v1641_v30 }
  0x2b   : > { %v1720_v6 = vperm.slane %v436_v2, %v1641_v30  ;;  %v519_v7 = vrot.slane %v1703_v61, 4  ;;  %v540_v9 = vsel %vm375_vm0, %v539_v53, %v1699_v59  ;;  %v473_v10 = vrot.slane %v1706_v62, 4 }
  0x2c   : > { %v508_v11 = vsel %vm375_vm0, %v507_v63, %v1683_v50  ;;  %v552_v14 = vsel %vm375_vm0, %v551_v54, %v1710_v0  ;;  %v563_v15 = vrot.slane %v1713_v1, 4  ;;  %v437_v16 = vrot.slane %v1692_v55, 4 }
  0x2d   : > { %v480_v17 = vsel %vm375_vm0, %v479_v60, %v1720_v6  ;;  %v520_v18 = vsel %vm375_vm0, %v519_v7, %v1659_v37  ;;  %v541_v19 = vrot.slane %v1699_v59, 4  ;;  %v1750_v21 = vperm.slane %v508_v11, %v1641_v30 }
  0x2e   : > { %v1747_v20 = vperm.slane %v520_v18, %v1641_v30  ;;  %v546_v29 = vperm.slane %v540_v9, %v1610_v5  ;;  %v558_v31 = vperm.slane %v552_v14, %v1610_v5  ;;  %v481_v32 = vrot.slane %v1720_v6, 4 }
  0x2f   : > { %v553_v33 = vrot.slane %v1710_v0, 4  ;;  %v564_v35 = vsel %vm375_vm0, %v563_v15, %v1732_v12  ;;  %v575_v36 = vrot.slane %v1735_v13, 4  ;;  %v474_v39 = vsel %vm375_vm0, %v1724_v8, %v473_v10 }
  0x30   : > { %v1317_v38 = vpack.i.bf16 %v1747_v20, %v480_v17  ;;  %v531_v42 = vrot.slane %v1750_v21, 4  ;;  %v587_v43 = vrot.slane %v558_v31, 4  ;;  %v656_v45 = vperm.slane %v1756_v23, %v1610_v5 }
  0x31   : > { %v576_v44 = vsel %vm375_vm0, %v575_v36, %v1753_v22  ;;  %v666_v46 = vperm.slane %v1759_v24, %v1610_v5  ;;  %v425_v48 = vrot.slane %v1680_v49, 4  ;;  %v570_v53 = vperm.slane %v564_v35, %v1610_v5 }
  0x32   : > { %1318 = vrot.lane.b32.xlu1 %v1317_v38, %s1480_s6  ;;  %v532_v51 = vsel %vm375_vm0, 0.0, %v531_v42  ;;  %v582_v54 = vperm.slane %v576_v44, %v1610_v5  ;;  %v450_v55 = vsel %vm375_vm0, %v1650_v34, %v449_v4  ;;  %v588_v57 = vsel %vm375_vm0, %v587_v43, %v546_v29  ;;  %s1493_s6 = smov 96  }
  0x33   : > { %v1307_v56 = vpack.i.bf16 %v532_v51, %v474_v39  ;;  %v671_v58 = vrot.slane %v666_v46, 4  ;;  %v426_v60 = vsel %vm375_vm0, %v1627_v25, %v425_v48  ;;  %v458_v2 = vperm.slane %v450_v55, %v1641_v30 }
  0x34   : > { %v611_v63 = vrot.slane %v582_v54, 4  ;;  %v434_v49 = vperm.slane %v426_v60, %v1641_v30  ;;  %v509_v7 = vrot.slane %v1683_v50, 4  ;;  %v589_v34 = vrot.slane %v546_v29, 4 }
  0x35   : > { %1308 = vrot.lane.b32.xlu0 %v1307_v56, %s1481_s10  ;;  %v672_v9 = vsel %vm375_vm0, %v671_v58, %v656_v45  ;;  %v613_v4 = vrot.slane %v570_v53, 4  ;;  %v673_v10 = vrot.slane %v656_v45, 4  ;;  %v594_v11 = vperm.slane %v588_v57, %v1641_v30 }
  0x36   : > { %v612_v14 = vsel %vm375_vm0, %v611_v63, %v570_v53  ;;  %v475_v25 = vrot.slane %v458_v2, 4  ;;  %v510_v15 = vsel %vm375_vm0, %v1687_v52, %v509_v7  ;;  %v477_v18 = vrot.slane %v434_v49, 4 }
  0x37   : > { %v618_v17 = vperm.slane %v612_v14, %v1641_v30  ;;  %v518_v50 = vperm.slane %v510_v15, %v1641_v30  ;;  %v590_v35 = vsel %vm375_vm0, %v558_v31, %v589_v34  ;;  %v678_v36 = vperm.slane %v672_v9, %v1641_v30 }
  0x38   : > { %v476_v29 = vsel %vm375_vm0, %v475_v25, %v434_v49  ;;  %v614_v38 = vsel %vm375_vm0, %v582_v54, %v613_v4  ;;  %v674_v39 = vsel %vm375_vm0, %v666_v46, %v673_v10  ;;  %v598_v52 = vperm.slane %v590_v35, %v1641_v30 }
  0x39   : > { %v635_v42 = vrot.slane %v618_v17, 4  ;;  %v1312_v43 = vpack.i.bf16 %v518_v50, %v476_v29  ;;  %v533_v44 = vrot.slane %v518_v50, 4  ;;  %v478_v45 = vsel %vm375_vm0, %v458_v2, %v477_v18 }
  0x3a   : > { %v622_v48 = vperm.slane %v614_v38, %v1641_v30  ;;  %v438_v31 = vsel %vm375_vm0, %v1631_v26, %v437_v16  ;;  %v461_v51 = vrot.slane %v1634_v27, 4  ;;  %v682_v54 = vperm.slane %v674_v39, %v1641_v30 }
  0x3b   : > { %v636_v53 = vsel %vm375_vm0, %v635_v42, %v594_v11  ;;  %v1812_v46 = vperm.slane %v438_v31, %v1641_v30  ;;  %v522_v55 = vsel %vm375_vm0, %v1703_v61, %v521_v3  ;;  %v534_v57 = vsel %vm375_vm0, 0.0, %v533_v44 }
  0x3c   : > { %v1322_v56 = vpack.i.bf16 %v678_v36, %v636_v53  ;;  %v639_v58 = vrot.slane %v622_v48, 4  ;;  %v462_v26 = vsel %vm375_vm0, %v1637_v28, %v461_v51  ;;  %v535_v27 = vrot.slane %v1747_v20, 4 }
  0x3d   : > { %v651_v16 = vrot.slane %v1756_v23, 4  ;;  %1313 = vrot.lane.b32.xlu0 %v1312_v43, %s1482_s9  ;;  %v1824_v60 = vperm.slane %v522_v55, %v1641_v30  ;;  %v641_v37 = vrot.slane %v598_v52, 4  ;;  %v697_v3 = vrot.slane %v682_v54, 4  ;;  %s1494_s9 = smov 120  }
  0x3e   : > { %1323 = vrot.lane.b32.xlu1 %v1322_v56, %s1483_s11  ;;  %v640_v61 = vsel %vm375_vm0, %v639_v58, %v598_v52  ;;  %v637_v63 = vrot.slane %v594_v11, 4  ;;  %v695_v49 = vrot.slane %v678_v36, 4  ;;  %v661_v2 = vrot.slane %v1759_v24, 4 }
  0x3f   : > { %v1337_v28 = vpack.i.bf16 %v534_v57, %v478_v45  ;;  %v470_v7 = vperm.slane %v462_v26, %v1641_v30  ;;  %v485_v23 = vrot.slane %v1812_v46, 4  ;;  %v1332_v9 = vpack.i.bf16 %v682_v54, %v640_v61 }
  0x40   : > { %v638_v34 = vsel %vm375_vm0, %v618_v17, %v637_v63  ;;  %v696_v4 = vsel %vm375_vm0, 0.0, %v695_v49  ;;  %v542_v10 = vsel %vm375_vm0, %v1666_v40, %v541_v19  ;;  %v537_v11 = vrot.slane %v1824_v60, 4 }
  0x41   : > { %v642_v14 = vsel %vm375_vm0, %v622_v48, %v641_v37  ;;  %v1327_v24 = vpack.i.bf16 %v696_v4, %v638_v34  ;;  %v550_v25 = vperm.slane %v542_v10, %v1610_v5  ;;  %v698_v15 = vsel %vm375_vm0, 0.0, %v697_v3 }
  0x42   : > { %v554_v17 = vsel %vm375_vm0, %v1669_v41, %v553_v33  ;;  %v565_v50 = vrot.slane %v1732_v12, 4  ;;  %v577_v59 = vrot.slane %v1753_v22, 4  ;;  %v652_v19 = vsel %vm375_vm0, 0.0, %v651_v16 }
  0x43   : > { %1328 = vrot.lane.b32.xlu2 %v1327_v24, %s1484_s13  ;;  %v562_v40 = vperm.slane %v554_v17, %v1610_v5  ;;  %v662_v18 = vsel %vm375_vm0, 0.0, %v661_v2  ;;  %v601_v35 = vrot.slane %v550_v25, 4  ;;  %v660_v41 = vperm.slane %v652_v19, %v1610_v5  ;;  %v881_v24 = vld [vmem:[%s2009_s3 + $0x68] sm:$0xff]  ;;  %v878_v17 = vld [vmem:[%s2009_s3 + $0x50] sm:$0xff]  ;;  %v875_v19 = vld [vmem:[%s2009_s3 + $0x38] sm:$0xff] }
  0x44   : > { %v566_v36 = vsel %vm375_vm0, %v1713_v1, %v565_v50  ;;  %v578_v0 = vsel %vm375_vm0, %v1735_v13, %v577_v59  ;;  %v670_v12 = vperm.slane %v662_v18, %v1610_v5  ;;  %v486_v22 = vsel %vm375_vm0, %v470_v7, %v485_v23  ;;  %v877_v50 = vld [vmem:[%s2009_s3 + $0x48] sm:$0xff]  ;;  %v876_v59 = vld [vmem:[%s2009_s3 + $0x40] sm:$0xff]  ;;  %v874_v18 = vld [vmem:[%s2009_s3 + $0x30] sm:$0xff] }
  0x45   : > { %1333 = vrot.lane.b32.xlu0 %v1332_v9, %s1485_s14  ;;  %v574_v33 = vperm.slane %v566_v36, %v1610_v5  ;;  %v586_v29 = vperm.slane %v578_v0, %v1610_v5  ;;  %v599_v38 = vrot.slane %v562_v40, 4  ;;  %v538_v1 = vsel %vm375_vm0, 0.0, %v537_v11  ;;  %v883_v11 = vld [vmem:[%s2009_s3 + $0x78] sm:$0xff]  ;;  %v872_v36 = vld [vmem:[%s2009_s3 + $0x20] sm:$0xff] }
  0x46   : > { %1338 = vrot.lane.b32.xlu1 %v1337_v28, %s1486_s23  ;;  %v1347_v39 = vpack.i.bf16 %v698_v15, %v642_v14  ;;  %v683_v42 = vrot.slane %v670_v12, 4  ;;  %v483_v13 = vrot.slane %v470_v7, 4  ;;  %v685_v45 = vrot.slane %v660_v41, 4  ;;  %884 = vmatpush.msra.mxu0 %v883_v11  ;;  %v882_v14 = vld [vmem:[%s2009_s3 + $0x70] sm:$0xff]  ;;  %v879_v15 = vld [vmem:[%s2009_s3 + $0x58] sm:$0xff] }
  0x47   : > { %v600_v43 = vsel %vm375_vm0, %v599_v38, %v550_v25  ;;  %v623_v44 = vrot.slane %v586_v29, 4  ;;  %v625_v52 = vrot.slane %v574_v33, 4  ;;  %v602_v51 = vsel %vm375_vm0, %v562_v40, %v601_v35  ;;  %1202 = vmatpush.msra.mxu1 %v883_v11  ;;  %v880_v25 = vld [vmem:[%s2009_s3 + $0x60] sm:$0xff]  ;;  %v873_v35 = vld [vmem:[%s2009_s3 + $0x28] sm:$0xff] }
  0x48   : > { %v606_v48 = vperm.slane %v600_v43, %v1641_v30  ;;  %v684_v31 = vsel %vm375_vm0, %v683_v42, %v660_v41  ;;  %v484_v5 = vsel %vm375_vm0, %v483_v13, %v1812_v46  ;;  %v1362_v53 = vpack.i.bf16 %v538_v1, %v486_v22  ;;  %885 = vmatpush.msra.mxu0 %v882_v14  ;;  %v871_v41 = vld [vmem:[%s2009_s3 + $0x18] sm:$0xff]  ;;  %v868_v38 = vld [vmem:[%s2009_s3] sm:$0xff] }
  0x49   : > { %v624_v54 = vsel %vm375_vm0, %v623_v44, %v574_v33  ;;  %v690_v55 = vperm.slane %v684_v31, %v1641_v30  ;;  %v626_v56 = vsel %vm375_vm0, %v586_v29, %v625_v52  ;;  %v1342_v16 = vpack.i.bf16 %v1824_v60, %v484_v5  ;;  %1203 = vmatpush.msra.mxu1 %v882_v14  ;;  %v870_v33 = vld [vmem:[%s2009_s3 + $0x10] sm:$0xff]  ;;  %v869_v29 = vld [vmem:[%s2009_s3 + $0x8] sm:$0xff] }
  0x4a   : > { %v630_v57 = vperm.slane %v624_v54, %v1641_v30  ;;  %v645_v58 = vrot.slane %v606_v48, 4  ;;  %v634_v26 = vperm.slane %v626_v56, %v1641_v30  ;;  %v610_v61 = vperm.slane %v602_v51, %v1641_v30  ;;  %886 = vmatpush.msra.mxu0 %v881_v24 }
  0x4b   : > { %v699_v37 = vrot.slane %v690_v55, 4  ;;  %v686_v3 = vsel %vm375_vm0, %v670_v12, %v685_v45  ;;  %1343 = vrot.lane.b32.xlu2 %v1342_v16, %s1487_s24  ;;  %v482_v63 = vsel %vm375_vm0, %v1677_v47, %v481_v32  ;;  %v536_v49 = vsel %vm375_vm0, 0.0, %v535_v27  ;;  %1204 = vmatpush.msra.mxu1 %v881_v24 }
  0x4c   : > { %v647_v46 = vrot.slane %v634_v26, 4  ;;  %v646_v60 = vsel %vm375_vm0, %v630_v57, %v645_v58  ;;  %v694_v28 = vperm.slane %v686_v3, %v1641_v30  ;;  %v1352_v23 = vpack.i.bf16 %v536_v49, %v482_v63  ;;  %887 = vmatpush.msra.mxu0 %v880_v25 }
  0x4d   : > { %1363 = vrot.lane.b32.xlu0 %v1362_v53, %s1488_s27  ;;  %v700_v2 = vsel %vm375_vm0, 0.0, %v699_v37  ;;  %v643_v6 = vrot.slane %v630_v57, 4  ;;  %v649_v32 = vrot.slane %v610_v61, 4  ;;  %1205 = vmatpush.msra.mxu1 %v880_v25  ;;  %v471_v13 = vrot.slane %v1724_v8, 4 }
  0x4e   : > { %1348 = vrot.lane.b32.xlu1 %v1347_v39, %s1489_s30  ;;  %v648_v7 = vsel %vm375_vm0, %v647_v46, %v610_v61  ;;  %v1367_v9 = vpack.i.bf16 %v700_v2, %v646_v60  ;;  %v701_v27 = vrot.slane %v694_v28, 4  ;;  %888 = vmatpush.msra.mxu0 %v879_v15 }
  0x4f   : > { %v1372_v34 = vpack.i.bf16 %v694_v28, %v648_v7  ;;  %v644_v47 = vsel %vm375_vm0, %v643_v6, %v606_v48  ;;  %v650_v30 = vsel %vm375_vm0, %v634_v26, %v649_v32  ;;  %1206 = vmatpush.msra.mxu1 %v879_v15  ;;  %v472_v52 = vsel %vm375_vm0, %v471_v13, %v1706_v62 }
  0x50   : > { %v1357_v20 = vpack.i.bf16 %v690_v55, %v644_v47  ;;  %v702_v4 = vsel %vm375_vm0, 0.0, %v701_v27  ;;  %889 = vmatpush.msra.mxu0 %v878_v17  ;;  %vm912_vm0 = vcmask 1046528  }
  0x51   : > { %v1377_v10 = vpack.i.bf16 %v702_v4, %v650_v30  ;;  %1207 = vmatpush.msra.mxu1 %v878_v17 }
  0x52   : > { %890 = vmatpush.msra.mxu0 %v877_v50 }
  0x53   : > { %1353 = vrot.lane.b32.xlu2 %v1352_v23, %s1490_s5  ;;  %1208 = vmatpush.msra.mxu1 %v877_v50 }
  0x54   : > { %891 = vmatpush.msra.mxu0 %v876_v59 }
  0x55   : > { %1368 = vrot.lane.b32.xlu0 %v1367_v9, %s1491_s8  ;;  %1209 = vmatpush.msra.mxu1 %v876_v59  ;;  %s1195_s8 = sshll.u32 %s1460_s18, 1  ;;  %s305_s18 = sand.u32 1, %s1452_s16  }
  0x56   : > { %1373 = vrot.lane.b32.xlu1 %v1372_v34, %s1492_s12  ;;  %892 = vmatpush.msra.mxu0 %v875_v19  ;;  %s1196_s12 = sshll.u32 %s1464_s19, 2  ;;  %s1017_s30 = scalar_lea.sflag [#allocation3], %s305_s18 }
  0x57   : > { %1210 = vmatpush.msra.mxu1 %v875_v19 }
  0x58   : > { %893 = vmatpush.msra.mxu0 %v874_v18 }
  0x59   : > { %1211 = vmatpush.msra.mxu1 %v874_v18 }
  0x5a   : > { %894 = vmatpush.msra.mxu0 %v873_v35 }
  0x5b   : > { %1358 = vrot.lane.b32.xlu2 %v1357_v20, %s1493_s6  ;;  %1212 = vmatpush.msra.mxu1 %v873_v35  ;;  %s1028_s6 = sadd.s32 %s1196_s12, %s1195_s8 }
  0x5c   : > { %895 = vmatpush.msra.mxu0 %v872_v36  ;;  %s1197_s19 = sshll.u32 %s1028_s6, 3 }
  0x5d   : > { %1213 = vmatpush.msra.mxu1 %v872_v36  ;;  %s1030_s14 = scalar_lea.hbm %s2010_s4, %s1197_s19  ;;  %s1402_s19 = scalar_lea.hbm %s2010_s4, 64 }
  0x5e   : > { %896 = vmatpush.msra.mxu0 %v871_v41  ;;  %s1033_s27 = sshll.u32 %s1030_s14, 4  ;;  %s1034_s27 = int_to_ptr.hbm [resolvable:$true] %s1033_s27 }
  0x5f   : > { %1214 = vmatpush.msra.mxu1 %v871_v41  ;;  %s1396_s5 = sshra.s32 %s1034_s27, 4  ;;  %s1397_s5 = int_to_ptr.hbm [resolvable:$true] %s1396_s5 }
  0x60   : > { %897 = vmatpush.msra.mxu0 %v870_v33  ;;  %s1398_s8 = scalar_lea.hbm %s1397_s5, 16  ;;  %p1403_p7 = scmp.lt.s32.totalorder %s1397_s5, %s2010_s4 }
  0x61   : > { %1215 = vmatpush.msra.mxu1 %v870_v33  ;;  %p1399_p4 = scmp.ne.s32.totalorder %s1397_s5, %s1398_s8  ;;  %p1404_p9 = scmp.lt.s32.totalorder %s1402_s19, %s1398_s8 }
  0x62   : > { %898 = vmatpush.msra.mxu0 %v869_v29 }
  0x63   : > { %1378 = vrot.lane.b32.xlu2 %v1377_v10, %s1494_s9  ;;  %1216 = vmatpush.msra.mxu1 %v869_v29  ;;  %s1172_s9 = sshll.u32 %s305_s18, 4  ;;  %p1400_p5 = pnand %p1399_p4, %p1572_p3 }
  0x64   : > { %899 = vmatpush.msra.mxu0 %v868_v38  ;;  %s307_s23 = scalar_lea.vmem [#allocation2], %s1172_s9  ;;  %p1405_p10 = por %p1404_p9, %p1403_p7 }
  0x65   : > { %1217 = vmatpush.msra.mxu1 %v868_v38  ;;  %s1031_s24 = sshll.u32 %s307_s23, 4  ;;  %p1401_p6 = pneg %p1400_p5  ;;  %s1032_s24 = int_to_ptr.vmem [resolvable:$true] %s1031_s24 }
  0x67   : > { %p1406_p11 = pnand %p1405_p10, %p1401_p6 }
  0x9d   : > { %v1911_v40 = vpop.permute.xlu2 %1328 }
  0x9e   : > { %v1331_v60 = vunpack.i.h.bf16 %v1911_v40  ;;  %v1330_v7 = vunpack.i.l.bf16 %v1911_v40 }
  0xa4   : > { %v1319_v0 = vpop.permute.xlu1 %1318 }
  0xa5   : > { %v1344_v22 = vpop.permute.xlu2 %1343  ;;  %v1321_v51 = vunpack.i.h.bf16 %v1319_v0  ;;  %v1320_v5 = vunpack.i.l.bf16 %v1319_v0 }
  0xa6   : > { %v1345_v2 = vunpack.i.l.bf16 %v1344_v22 }
  0xa7   : > { %v1309_v12 = vpop.permute.xlu0 %1308 }
  0xa8   : > { %v1311_v43 = vunpack.i.h.bf16 %v1309_v12  ;;  %v1310_v44 = vunpack.i.l.bf16 %v1309_v12 }
  0xaa   : > { %v825_v54 = vsel %vm823_vm1, %v1750_v21, %v1311_v43  ;;  %v824_v55 = vsel %vm823_vm1, %v472_v52, %v1310_v44  ;;  %v1346_v21 = vunpack.i.h.bf16 %v1344_v22  ;;  %vm978_vm1 = vcmask 1040384  }
  0xad   : > { %v1354_v42 = vpop.permute.xlu2 %1353 }
  0xae   : > { %v1356_v26 = vunpack.i.h.bf16 %v1354_v42  ;;  %v1355_v16 = vunpack.i.l.bf16 %v1354_v42 }
  0xaf   : > { %v1314_v1 = vpop.permute.xlu0 %1313 }
  0xb0   : > { %v1324_v39 = vpop.permute.xlu1 %1323  ;;  %v1316_v45 = vunpack.i.h.bf16 %v1314_v1  ;;  %v1315_v48 = vunpack.i.l.bf16 %v1314_v1 }
  0xb1   : > { %v1326_v34 = vunpack.i.h.bf16 %v1324_v39  ;;  %v1325_v47 = vunpack.i.l.bf16 %v1324_v39 }
  0xb2   : > { %v827_v57 = vsel %vm826_vm2, %v824_v55, %v1315_v48  ;;  %v828_v58 = vsel %vm826_vm2, %v825_v54, %v1316_v45 }
  0xb5   : > { %v1359_v61 = vpop.permute.xlu2 %1358 }
  0xb6   : > { %v1361_v35 = vunpack.i.h.bf16 %v1359_v61  ;;  %v1360_v36 = vunpack.i.l.bf16 %v1359_v61 }
  0xb7   : > { %v1334_v31 = vpop.permute.xlu0 %1333 }
  0xb8   : > { %v1339_v53 = vpop.permute.xlu1 %1338  ;;  %v1336_v4 = vunpack.i.h.bf16 %v1334_v31  ;;  %v1335_v10 = vunpack.i.l.bf16 %v1334_v31 }
  0xb9   : > { %v1341_v56 = vunpack.i.h.bf16 %v1339_v53  ;;  %v1340_v8 = vunpack.i.l.bf16 %v1339_v53 }
  0xbb   : > { %v830_v37 = vsel %vm829_vm3, %v827_v57, %v1340_v8  ;;  %v831_v62 = vsel %vm829_vm3, %v828_v58, %v1341_v56 }
  0xbc   : > { %v833_v3 = vsel %vm832_vm4, %v830_v37, %v1320_v5  ;;  %v834_v46 = vsel %vm832_vm4, %v831_v62, %v1321_v51 }
  0xbd   : > { %v836_v63 = vsel %vm835_vm5, %v833_v3, %v1355_v16  ;;  %v837_v49 = vsel %vm835_vm5, %v834_v46, %v1356_v26  ;;  %v1379_v40 = vpop.permute.xlu2 %1378 }
  0xbe   : > { %v839_v20 = vsel %vm838_vm6, %v836_v63, %v1345_v2  ;;  %v840_v32 = vsel %vm838_vm6, %v837_v49, %v1346_v21  ;;  %v1381_v33 = vunpack.i.h.bf16 %v1379_v40  ;;  %v1380_v29 = vunpack.i.l.bf16 %v1379_v40 }
  0xbf   : > { %v1364_v28 = vpop.permute.xlu0 %1363 }
  0xc0   : > { %v1366_v23 = vunpack.i.h.bf16 %v1364_v28  ;;  %v1365_v9 = vunpack.i.l.bf16 %v1364_v28  ;;  %v1349_v6 = vpop.permute.xlu1 %1348 }
  0xc1   : > { %v1351_v24 = vunpack.i.h.bf16 %v1349_v6  ;;  %v1350_v25 = vunpack.i.l.bf16 %v1349_v6 }
  0xc2   : > { %v842_v27 = vsel %vm841_vm7, %v839_v20, %v1365_v9  ;;  %v843_v30 = vsel %vm841_vm7, %v840_v32, %v1366_v23 }
  0xc3   : > { %v845_v11 = vsel %vm844_vm8, %v842_v27, %v1325_v47  ;;  %v846_v14 = vsel %vm844_vm8, %v843_v30, %v1326_v34 }
  0xc4   : > { %v848_v15 = vsel %vm847_vm9, %v845_v11, %v1330_v7  ;;  %v849_v17 = vsel %vm847_vm9, %v846_v14, %v1331_v60 }
  0xc5   : > { %v851_v50 = vsel %vm850_vm10, %v848_v15, %v1335_v10  ;;  %v852_v59 = vsel %vm850_vm10, %v849_v17, %v1336_v4 }
  0xc6   : > { %v854_v19 = vsel %vm853_vm11, %v851_v50, %v1350_v25  ;;  %v855_v18 = vsel %vm853_vm11, %v852_v59, %v1351_v24 }
  0xc7   : > { %v1369_v0 = vpop.permute.xlu0 %1368  ;;  %v857_v38 = vsel %vm856_vm12, %v854_v19, %v1360_v36  ;;  %v858_v1 = vsel %vm856_vm12, %v855_v18, %v1361_v35 }
  0xc8   : > { %v1371_v41 = vunpack.i.h.bf16 %v1369_v0  ;;  %v1370_v12 = vunpack.i.l.bf16 %v1369_v0  ;;  %v1374_v22 = vpop.permute.xlu1 %1373 }
  0xc9   : > { %v1376_v39 = vunpack.i.h.bf16 %v1374_v22  ;;  %v1375_v42 = vunpack.i.l.bf16 %v1374_v22 }
  0xca   : > { %v860_v13 = vsel %vm859_vm13, %v857_v38, %v1370_v12  ;;  %v861_v43 = vsel %vm859_vm13, %v858_v1, %v1371_v41 }
  0xcb   : > { %v863_v44 = vsel %vm862_vm14, %v860_v13, %v1375_v42  ;;  %v864_v52 = vsel %vm862_vm14, %v861_v43, %v1376_v39 }
  0xcc   : > { %v866_v45 = vsel %vm865_vm15, %v863_v44, %v1380_v29  ;;  %v867_v48 = vsel %vm865_vm15, %v864_v52, %v1381_v33 }
  0xcd   : > { %900 = vmatmul.f32.vlgmr.msra.gmra.mxu0 %v866_v45  ;;  %903 = vmatmul.f32.vlgmr.msra.gmra.mxu1 %v867_v48 }
 0x14a   : > { %v901_v31 = vpop.f32.mrf.mxu0  ;;  %v904_v51 = vpop.f32.mrf.mxu1 }
 0x14b   : > { %v907_v5 = vmul.f32 0.25, %v901_v31  ;;  %v918_v53 = vmul.f32 0.25, %v904_v51  ;;  %v908_v56 = vmul.f32 0.75, %v901_v31  ;;  %v909_v58 = vmul.f32 0.75, %v904_v51 }
 0x14d   : > { %v921_v54 = vrot.slane %v907_v5, 1  ;;  %v922_v55 = vrot.slane %v918_v53, 1  ;;  %v913_v26 = vrot.slane %v908_v56, 1  ;;  %v914_v16 = vrot.slane %v909_v58, 1 }
 0x14f   : > { %v923_v8 = vsel %vm912_vm0, %v921_v54, %v922_v55  ;;  %v927_v3 = vadd.f32 %v922_v55, %v909_v58  ;;  %v915_v60 = vsel %vm912_vm0, %v913_v26, %v914_v16 }
 0x150   : > { %v926_v57 = vadd.f32 %v923_v8, %v908_v56  ;;  %v917_v2 = vadd.f32 %v915_v60, %v907_v5 }
 0x152   : > { %945 = vst [vmem:[#allocation1] sm:$0xff] %v926_v57  ;;  %v929_v9 = vrot.slane %v917_v2, 1  ;;  %v930_v34 = vrot.slane %v917_v2, 2  ;;  %v931_v27 = vrot.slane %v917_v2, 3  ;;  %v932_v11 = vrot.slane %v917_v2, 4 }
 0x153   : > { %v933_v25 = vrot.slane %v917_v2, 5  ;;  %v935_v15 = vrot.slane %v917_v2, 7  ;;  %v934_v50 = vrot.slane %v917_v2, 6 }
 0x159   : > { %v947_v37 = vld [vmem:[#allocation1 + $0x1] ss:$9 sm:$0xff]  ;;  %v951_v61 = vld [vmem:[#allocation1 + $0x3] ss:$9 sm:$0xff] }
 0x15a   : > { %v949_v62 = vld [vmem:[#allocation1 + $0x2] ss:$9 sm:$0xff]  ;;  %v953_v46 = vld [vmem:[#allocation1 + $0x4] ss:$9 sm:$0xff]  ;;  %v962_v28 = vperm.slane %v947_v37, 0  ;;  %v964_v23 = vperm.slane %v951_v61, 0 }
 0x15b   : > { %v955_v63 = vld [vmem:[#allocation1 + $0x5] ss:$9 sm:$0xff]  ;;  %v959_v21 = vld [vmem:[#allocation1 + $0x7] ss:$9 sm:$0xff]  ;;  %v963_v7 = vperm.slane %v949_v62, 0  ;;  %v965_v6 = vperm.slane %v953_v46, 0 }
 0x15c   : > { %v957_v49 = vld [vmem:[#allocation1 + $0x6] ss:$9 sm:$0xff]  ;;  %v966_v20 = vperm.slane %v955_v63, 0  ;;  %v979_v32 = vsel %vm978_vm1, %v917_v2, %v962_v28  ;;  %v968_v14 = vperm.slane %v959_v21, 0  ;;  %v981_v24 = vsel %vm978_vm1, %v930_v34, %v964_v23 }
 0x15d   : > { %960 = vst [vmem:[#allocation1] sm:$0xff] %v927_v3  ;;  %v967_v30 = vperm.slane %v957_v49, 0  ;;  %v980_v10 = vsel %vm978_vm1, %v929_v9, %v963_v7  ;;  %v982_v17 = vsel %vm978_vm1, %v931_v27, %v965_v6 }
 0x15e   : > { %v983_v59 = vsel %vm978_vm1, %v932_v11, %v966_v20  ;;  %v985_v18 = vsel %vm978_vm1, %v934_v50, %v968_v14 }
 0x15f   : > { %v984_v40 = vsel %vm978_vm1, %v933_v25, %v967_v30 }
 0x164   : > { %v961_v47 = vld [vmem:[#allocation1] ss:$9 sm:$0xff] }
 0x165   : > { %v969_v4 = vperm.slane %v961_v47, 0  ;;  %995 = vst [vmem:[#allocation1] ss:$4 sm:$0xff] %v979_v32 }
 0x166   : > { %997 = vst [vmem:[#allocation1 + $0x1] ss:$4 sm:$0xff] %v980_v10 }
 0x167   : > { %999 = vst [vmem:[#allocation1 + $0x2] ss:$4 sm:$0xff] %v981_v24  ;;  %v986_v19 = vsel %vm978_vm1, %v935_v15, %v969_v4 }
 0x168   : > { %1001 = vst [vmem:[#allocation1 + $0x3] ss:$4 sm:$0xff] %v982_v17 }
 0x169   : > { %1003 = vst [vmem:[#allocation1 + $0x20] ss:$4 sm:$0xff] %v983_v59 }
 0x16a   : > { %1005 = vst [vmem:[#allocation1 + $0x21] ss:$4 sm:$0xff] %v984_v40 }
 0x16b   : > { %1007 = vst [vmem:[#allocation1 + $0x22] ss:$4 sm:$0xff] %v985_v18 }
 0x16c   : > { %1009 = vst [vmem:[#allocation1 + $0x23] ss:$4 sm:$0xff] %v986_v19 }
 0x16f   : > { %v1010_v35 = vld.sshfl [vmem:[#allocation1] sm:$0xff pattern:$0x73625140] }
 0x170   : > { %1014 = vst [vmem:[%s307_s23] sm:$0xff] %v1010_v35 }
 0x173   : > { %v1011_v36 = vld.sshfl [vmem:[#allocation1 + $0x20] sm:$0xff pattern:$0x73625140] }
 0x174   : > { %1015 = vst [vmem:[%s307_s23 + $0x8] sm:$0xff] %v1011_v36 }
 0x175   : > { %1409 = shalt.err (!%p1406_p11)
}
 0x176   : > { %s1495_s18 = smov 128  }
 0x177   : > { %1218 = dma.vmem_to_hbm [thread:$0]  (%p1572_p3), %s1032_s24, 256, %s1034_s27, %s1017_s30, %s1495_s18, %s1495_s18, %s1481_s10  }
 0x178 PF: > { %p1224_p12 = scmp.ge.s32.totalorder %s1476_s22, 2  ;;  %s1048_s13 = sand.u32 1, %s1448_s15  }
 0x179   : > { %s1049_s14 = scalar_lea.sflag [#allocation3], %s1048_s13 }
 0x17a   : > { %p1221_p13 = pnand %p1224_p12, %p1581_p8 }
 0x17c   : > { %p1222_p0 = pneg %p1221_p13 }
 0x17e   : > { %1443 = dma.done.wait (%p1222_p0), %s1049_s14, 256  }
 0x17f   : > { %1445 = vsyncadd (%p1222_p0), %s1049_s14, 4294967040  ;;  %s17_s22 = sadd.s32 1, %s1476_s22   ;;  %s2014_s15 = smov %s1452_s16 }
 0x180   : > { %p14_p1 = scmp.ge.s32.totalorder %s17_s22, 6   ;;  %s2015_s16 = smov %s1456_s17 }
 0x181   : > { %s2016_s17 = smov %s1590_s7  ;;  %s2017_s18 = smov %s1468_s20 }
 0x182   : > { %s2018_s19 = smov %s1472_s21  ;;  %s2019_s20 = smov %s2022_s25 }
 0x183   : > { %s2020_s21 = smov %s2026_s26  ;;  %16 = sbr.rel (!%p14_p1) target bundleno = 5 (0x5), region = 91 }
 0x188   :  { %1055 = vsyncpa [#allocation3], 1 }
 0x189   :  { %1057 = vsyncpa [#allocation3 + $0x1], 1 }

</bundles_post_ra>
